<compile_context>
chip_gen: v5e
topology: v5e:2x2
jax: 0.10.0
libtpu: 0.0.40
codegen_flags: <defaults>
</compile_context>

<pallas_src>
import functools

import jax
import jax.numpy as jnp
from jax.experimental import pallas as pl
from jax.experimental.pallas import tpu as pltpu


def _cdiv(a, b):
    return -(-a // b)


def _round_up(x, m):
    return ((x + m - 1) // m) * m


def _choose_batch_tile(B, batch_tile):
    """Pick a sublane-aligned batch tile that minimises last-tile padding;
    prefer 128-aligned tiles (full MXU passes) only when that adds no padding."""
    n_t = max(1, _cdiv(B, batch_tile))
    tb8 = _round_up(_cdiv(B, n_t), 8)
    tb128 = _round_up(tb8, 128)
    if _round_up(B, tb128) <= _round_up(B, tb8):
        return tb128
    return tb8


def _highway_combine(h, z, d_pad):
    """z = [proj_pre | gate_pre] of width 2*d_pad; returns the new activation (f32)."""
    proj = jnp.maximum(z[:, :d_pad], 0.0)              # ReLU              (VALU)
    gate = 0.5 * jnp.tanh(0.5 * z[:, d_pad:]) + 0.5    # sigmoid, 1 EUP push
    return proj + gate * (h - proj)                    # == gate*h + (1-gate)*proj


def _highway_kernel_resident(x_ref, w_ref, b_ref, o_ref, *scratch, d_pad):
    """Grid = (batch_tiles, n_layers). Whole weight stack resident in VMEM.

    The output block index is constant across the inner layer axis, so o_ref is
    resident and doubles as the activation carry when x/out are f32 (scratch
    empty); otherwise a f32 VMEM scratch carries the activation.
    """
    layer = pl.program_id(1)
    n_layers = pl.num_programs(1)
    carry_ref = scratch[0] if scratch else o_ref

    @pl.when(layer == 0)
    def _init():
        carry_ref[...] = x_ref[...].astype(carry_ref.dtype)

    h = carry_ref[...].astype(jnp.float32)             # (TB, Dp) f32
    w = w_ref[layer]                                   # (Dp, 2*Dp), dynamic idx
    b = b_ref[layer]                                   # (1, 2*Dp)
    z = jnp.dot(h.astype(w_ref.dtype), w, preferred_element_type=jnp.float32)
    z = z + b.astype(jnp.float32)
    h_new = _highway_combine(h, z, d_pad)

    is_last = layer == n_layers - 1

    @pl.when(jnp.logical_not(is_last))
    def _carry():                                      # dead on last layer: skip
        carry_ref[...] = h_new.astype(carry_ref.dtype)

    @pl.when(is_last)
    def _finalize():
        o_ref[...] = h_new.astype(o_ref.dtype)


def _highway_kernel_streamed(x_ref, w_ref, b_ref, o_ref, h_ref, *, d_pad):
    """Grid = (n_layers, batch_tiles). Each layer's weights stream exactly once.

    The activation carry for ALL batch tiles lives in h_ref (n_bt, TB, Dp) f32,
    indexed by the inner batch-tile id.
    """
    layer = pl.program_id(0)
    bt = pl.program_id(1)

    @pl.when(layer == 0)
    def _init():
        h_ref[bt] = x_ref[...].astype(jnp.float32)

    h = h_ref[bt]                                      # (TB, Dp) f32
    z = jnp.dot(h.astype(w_ref.dtype), w_ref[...],
                preferred_element_type=jnp.float32)
    z = z + b_ref[...].astype(jnp.float32)
    h_new = _highway_combine(h, z, d_pad)

    @pl.when(layer != pl.num_programs(0) - 1)
    def _carry():                                      # dead on last layer: skip
        h_ref[bt] = h_new

    # The output block is revisited once per layer; keep it holding valid
    # current-layer data so intermediate writebacks are benign.  The final
    # layer's write is the result.
    o_ref[...] = h_new.astype(o_ref.dtype)


def highway_forward(x, w_packed, b_packed, *, batch_tile=512,
                    weight_resident_budget=40 * 2**20):
    """
    x        : (B, D)
    w_packed : (L, D, 2D)   columns = [proj | gate], already transposed for x @ W
    b_packed : (L, 1, 2D)
    """
    B, D = x.shape
    L = w_packed.shape[0]

    # TODO(synk): for D < 128 the (128/D)^2 lane-padding overhead makes plain XLA
    # faster; production callers should dispatch to XLA below D ~ 128.
    Dp = _round_up(max(D, 128), 128)
    TB = _choose_batch_tile(B, batch_tile)
    Bp = _round_up(B, TB)
    n_bt = Bp // TB

    # Zero-pad input (keeps padded lanes exactly zero through every layer).
    if (Bp, Dp) != (B, D):
        x_p = jnp.zeros((Bp, Dp), x.dtype).at[:B, :D].set(x)
    else:
        x_p = x

    if Dp != D:
        # proj half in cols [0:Dp), gate half in cols [Dp:2Dp); padded entries = 0.
        w_p = jnp.zeros((L, Dp, 2 * Dp), w_packed.dtype)
        w_p = w_p.at[:, :D, :D].set(w_packed[:, :, :D])
        w_p = w_p.at[:, :D, Dp:Dp + D].set(w_packed[:, :, D:])
        b_p = jnp.zeros((L, 1, 2 * Dp), b_packed.dtype)
        b_p = b_p.at[:, :, :D].set(b_packed[:, :, :D])
        b_p = b_p.at[:, :, Dp:Dp + D].set(b_packed[:, :, D:])
    else:
        w_p, b_p = w_packed, b_packed

    xb = jnp.dtype(x.dtype).itemsize
    wb = jnp.dtype(w_p.dtype).itemsize
    carry_in_out = (x.dtype == jnp.float32)

    # VMEM footprint (inputs/outputs double-buffered by the pipeline).
    io_tiles = 2 * TB * Dp * xb + 2 * TB * Dp * xb
    wstack = 2 * (L * Dp * 2 * Dp + L * 2 * Dp) * wb       # resident stack (x2 safety)
    wlayer = 2 * (Dp * 2 * Dp + 2 * Dp) * wb               # one layer, double-buffered
    resident = (wstack + io_tiles
                + (0 if carry_in_out else TB * Dp * 4)) <= weight_resident_budget

    cost = pl.CostEstimate(
        flops=int(L * (2 * Bp * Dp * (2 * Dp) + 6 * Bp * Dp)),
        transcendentals=int(L * Bp * Dp),
        bytes_accessed=int(x_p.size * xb + Bp * Dp * xb
                           + w_p.size * wb + b_p.size * wb),
    )

    if resident:
        # Strategy A: single weight DMA for the whole call; batch axis is
        # "parallel" (megacore-shardable), layer axis innermost + "arbitrary".
        kernel = functools.partial(_highway_kernel_resident, d_pad=Dp)
        grid = (n_bt, L)
        in_specs = [
            pl.BlockSpec((TB, Dp), lambda i, l: (i, 0)),               # x tile
            pl.BlockSpec((L, Dp, 2 * Dp), lambda i, l: (0, 0, 0)),     # all weights
            pl.BlockSpec((L, 1, 2 * Dp), lambda i, l: (0, 0, 0)),      # all biases
        ]
        out_specs = pl.BlockSpec((TB, Dp), lambda i, l: (i, 0))
        scratch_shapes = [] if carry_in_out else [pltpu.VMEM((TB, Dp), jnp.float32)]
        dim_sem = ("parallel", "arbitrary")
        vmem_needed = io_tiles + wstack + (0 if carry_in_out else TB * Dp * 4)
    else:
        # Strategy B: layer axis outermost -> each layer's weight block streams
        # exactly once; full-batch activation carry held in VMEM.
        # TODO(synk): for very large Dp (f32 D >~ 2k on v7x) the double-buffered
        # (Dp, 2Dp) weight block alone can exceed 64 MiB VMEM; single-buffer it
        # (pipeline_mode=pl.Buffered(1)) or tile the 2*Dp output dimension.
        kernel = functools.partial(_highway_kernel_streamed, d_pad=Dp)
        grid = (L, n_bt)
        in_specs = [
            pl.BlockSpec((TB, Dp), lambda l, i: (i, 0)),               # x tile
            pl.BlockSpec((None, Dp, 2 * Dp), lambda l, i: (l, 0, 0)),  # W_cat[l]
            pl.BlockSpec((None, 1, 2 * Dp), lambda l, i: (l, 0, 0)),   # b_cat[l]
        ]
        out_specs = pl.BlockSpec((TB, Dp), lambda l, i: (i, 0))
        scratch_shapes = [pltpu.VMEM((n_bt, TB, Dp), jnp.float32)]
        dim_sem = ("arbitrary", "arbitrary")
        vmem_needed = io_tiles + wlayer + n_bt * TB * Dp * 4

    vmem_limit = int(min(64 * 2**20, max(vmem_needed + (4 << 20), 32 << 20)))

    out_p = pl.pallas_call(
        kernel,
        out_shape=jax.ShapeDtypeStruct((Bp, Dp), x.dtype),
        grid=grid,
        in_specs=in_specs,
        out_specs=out_specs,
        scratch_shapes=scratch_shapes,
        compiler_params=pltpu.CompilerParams(
            dimension_semantics=dim_sem,
            vmem_limit_bytes=vmem_limit),
        cost_estimate=cost,
    )(x_p, w_p, b_p)

    return out_p[:B, :D]


def init_highway_params(key, input_dim, n_layers=1, dtype=jnp.float32):
    """Matches PyTorch init: xavier_normal_ on the (2D, D) weight,
    bias[:D] = 0 (proj), bias[D:] = 1 (gate). Returns packed stacked params.
    Use dtype=jnp.bfloat16 to halve weight HBM bytes / hit the bf16 MXU path."""
    fan_out, fan_in = 2 * input_dim, input_dim
    std = (2.0 / (fan_in + fan_out)) ** 0.5
    ws, bs = [], []
    for i in range(n_layers):
        k = jax.random.fold_in(key, i)
        w = std * jax.random.normal(k, (fan_out, fan_in), dtype=jnp.float32)
        wp = w[:input_dim, :].T                                   # (D, D)
        wg = w[input_dim:, :].T                                   # (D, D)
        ws.append(jnp.concatenate([wp, wg], axis=-1).astype(dtype))       # (D, 2D)
        bs.append(jnp.concatenate([jnp.zeros((1, input_dim)),
                                   jnp.ones((1, input_dim))],
                                  axis=-1).astype(dtype))                 # (1, 2D)
    return jnp.stack(ws), jnp.stack(bs)


def highway_reference(x, w_packed, b_packed):
    """Pure-JAX reference for correctness check."""
    L, D, _ = w_packed.shape
    for l in range(L):
        wp, wg = w_packed[l, :, :D], w_packed[l, :, D:]
        bp, bg = b_packed[l, :, :D], b_packed[l, :, D:]
        proj = jnp.maximum(x @ wp + bp, 0.0)
        gate = jax.nn.sigmoid(x @ wg + bg)
        x = gate * x + (1.0 - gate) * proj
    return x


if __name__ == "__main__":
    key = jax.random.PRNGKey(0)
    batch, input_dim, n_layers = 8, 32, 2

    kx, kp = jax.random.split(key)
    x = jax.random.normal(kx, (batch, input_dim), dtype=jnp.float32)
    w_packed, b_packed = init_highway_params(kp, input_dim, n_layers=n_layers)
    ref = highway_reference(x, w_packed, b_packed)

    # Strategy A: whole weight stack resident in VMEM (single weight DMA).
    out_a = jax.block_until_ready(highway_forward(x, w_packed, b_packed))
    assert out_a.shape == (batch, input_dim)
    assert jnp.allclose(out_a, ref, atol=1e-5, rtol=1e-5), "resident path mismatch"

    # Strategy B: per-layer weight streaming (forced by zero residency budget).
    out_b = jax.block_until_ready(
        highway_forward(x, w_packed, b_packed, weight_resident_budget=0))
    assert jnp.allclose(out_b, ref, atol=1e-5, rtol=1e-5), "streamed path mismatch"

    # bf16 weights: halves weight HBM traffic and uses the bf16 MXU path
    # (f32 accumulation).  The kernel downcasts the activation to bf16 per layer
    # for the matmul, so tolerance is loosened vs the mixed-precision reference.
    w_bf16 = w_packed.astype(jnp.bfloat16)
    b_bf16 = b_packed.astype(jnp.bfloat16)
    out_c = jax.block_until_ready(highway_forward(x, w_bf16, b_bf16))
    ref_bf16 = highway_reference(x, w_bf16, b_bf16)
    assert jnp.allclose(out_c, ref_bf16, atol=5e-2, rtol=5e-2), "bf16 path mismatch"

    print("KERNEL_OK")
</pallas_src>

<mosaic_0001>
module attributes {stable_mosaic.version = 11 : i64} {
  func.func @_highway_kernel_resident(%arg0: i32, %arg1: i32, %arg2: memref<8x128xf32, #tpu.memory_space<vmem>>, %arg3: memref<2x128x256xf32, #tpu.memory_space<vmem>>, %arg4: memref<2x1x256xf32, #tpu.memory_space<vmem>>, %arg5: memref<8x128xf32, #tpu.memory_space<vmem>>) attributes {dimension_semantics = [#tpu.dimension_semantics<parallel>, #tpu.dimension_semantics<arbitrary>], iteration_bounds = array<i64: 1, 2>, scalar_prefetch = 0 : i64, scratch_operands = 0 : i64, tpu.core_type = #tpu.core_type<tc>, window_params = [{transform_indices = @transform_0, window_bounds = array<i64: 8, 128>}, {pipeline_mode = #tpu.pipeline_mode<synchronous>, transform_indices = @transform_1, window_bounds = array<i64: 2, 128, 256>}, {pipeline_mode = #tpu.pipeline_mode<synchronous>, transform_indices = @transform_2, window_bounds = array<i64: 2, 1, 256>}, {transform_indices = @transform_3, window_bounds = array<i64: 8, 128>}]} {
    %c0_i32 = arith.constant 0 : i32
    %0 = arith.cmpi eq, %arg1, %c0_i32 : i32
    %1 = arith.extui %0 : i1 to i32
    %c0_i32_0 = arith.constant 0 : i32
    %2 = arith.cmpi ne, %1, %c0_i32_0 : i32
    scf.if %2 {
      %c0_12 = arith.constant 0 : index
      %c0_13 = arith.constant 0 : index
      %33 = vector.load %arg2[%c0_12, %c0_13] : memref<8x128xf32, #tpu.memory_space<vmem>>, vector<8x128xf32>
      %c0_14 = arith.constant 0 : index
      %c0_15 = arith.constant 0 : index
      %34 = vector.load %arg5[%c0_14, %c0_15] : memref<8x128xf32, #tpu.memory_space<vmem>>, vector<8x128xf32>
      tpu.vector_store %arg5[%c0_14, %c0_15], %33 {strides = array<i32>} : memref<8x128xf32, #tpu.memory_space<vmem>>, vector<8x128xf32>,
    } else {
    }
    %c0 = arith.constant 0 : index
    %c0_1 = arith.constant 0 : index
    %3 = vector.load %arg5[%c0, %c0_1] : memref<8x128xf32, #tpu.memory_space<vmem>>, vector<8x128xf32>
    %4 = arith.index_cast %arg1 : i32 to index
    %c0_2 = arith.constant 0 : index
    %c0_3 = arith.constant 0 : index
    %5 = vector.load %arg3[%4, %c0_2, %c0_3] : memref<2x128x256xf32, #tpu.memory_space<vmem>>, vector<1x128x256xf32>
    %6 = vector.shape_cast %5 : vector<1x128x256xf32> to vector<128x256xf32>
    %7 = arith.index_cast %arg1 : i32 to index
    %c0_4 = arith.constant 0 : index
    %c0_5 = arith.constant 0 : index
    %8 = vector.load %arg4[%7, %c0_4, %c0_5] : memref<2x1x256xf32, #tpu.memory_space<vmem>>, vector<1x1x256xf32>
    %9 = vector.shape_cast %8 : vector<1x1x256xf32> to vector<1x256xf32>
    %cst = arith.constant dense<0.000000e+00> : vector<8x256xf32>
    %10 = tpu.matmul %3, %6, %cst {dimension_numbers = #tpu.dot_dimension_numbers<[1], [0], [0], [1], [0, 0, 1, 1], [], []>} : vector<8x128xf32>, vector<128x256xf32>, vector<8x256xf32> -> vector<8x256xf32>
    %11 = vector.broadcast %9 : vector<1x256xf32> to vector<8x256xf32>
    %12 = arith.addf %10, %11 : vector<8x256xf32>
    %13 = vector.extract_strided_slice %12 {offsets = [0, 0], sizes = [8, 128], strides = [1, 1]} : vector<8x256xf32> to vector<8x128xf32>
    %cst_6 = arith.constant 0.000000e+00 : f32
    %14 = vector.broadcast %cst_6 : f32 to vector<8x128xf32>
    %15 = arith.maximumf %13, %14 : vector<8x128xf32>
    %16 = vector.extract_strided_slice %12 {offsets = [0, 128], sizes = [8, 128], strides = [1, 1]} : vector<8x256xf32> to vector<8x128xf32>
    %cst_7 = arith.constant 5.000000e-01 : f32
    %17 = vector.broadcast %cst_7 : f32 to vector<8x128xf32>
    %18 = arith.mulf %17, %16 : vector<8x128xf32>
    %19 = math.tanh %18 : vector<8x128xf32>
    %cst_8 = arith.constant 5.000000e-01 : f32
    %20 = vector.broadcast %cst_8 : f32 to vector<8x128xf32>
    %21 = arith.mulf %20, %19 : vector<8x128xf32>
    %cst_9 = arith.constant 5.000000e-01 : f32
    %22 = vector.broadcast %cst_9 : f32 to vector<8x128xf32>
    %23 = arith.addf %21, %22 : vector<8x128xf32>
    %24 = arith.subf %3, %15 : vector<8x128xf32>
    %25 = arith.mulf %23, %24 : vector<8x128xf32>
    %26 = arith.addf %15, %25 : vector<8x128xf32>
    %c1_i32 = arith.constant 1 : i32
    %27 = arith.cmpi eq, %arg1, %c1_i32 : i32
    %true = arith.constant true
    %28 = arith.xori %27, %true : i1
    %29 = arith.extui %28 : i1 to i32
    %c0_i32_10 = arith.constant 0 : i32
    %30 = arith.cmpi ne, %29, %c0_i32_10 : i32
    scf.if %30 {
      %c0_12 = arith.constant 0 : index
      %c0_13 = arith.constant 0 : index
      %33 = vector.load %arg5[%c0_12, %c0_13] : memref<8x128xf32, #tpu.memory_space<vmem>>, vector<8x128xf32>
      tpu.vector_store %arg5[%c0_12, %c0_13], %26 {strides = array<i32>} : memref<8x128xf32, #tpu.memory_space<vmem>>, vector<8x128xf32>,
    } else {
    }
    %31 = arith.extui %27 : i1 to i32
    %c0_i32_11 = arith.constant 0 : i32
    %32 = arith.cmpi ne, %31, %c0_i32_11 : i32
    scf.if %32 {
      %c0_12 = arith.constant 0 : index
      %c0_13 = arith.constant 0 : index
      %33 = vector.load %arg5[%c0_12, %c0_13] : memref<8x128xf32, #tpu.memory_space<vmem>>, vector<8x128xf32>
      tpu.vector_store %arg5[%c0_12, %c0_13], %26 {strides = array<i32>} : memref<8x128xf32, #tpu.memory_space<vmem>>, vector<8x128xf32>,
    } else {
    }
    return
  }
  func.func @transform_0(%arg0: i32, %arg1: i32) -> (i32, i32) {
    %c0_i32 = arith.constant 0 : i32
    %c0_i32_0 = arith.constant 0 : i32
    return %arg0, %c0_i32 : i32, i32
  }
  func.func @transform_1(%arg0: i32, %arg1: i32) -> (i32, i32, i32) {
    %c0_i32 = arith.constant 0 : i32
    %c0_i32_0 = arith.constant 0 : i32
    %c0_i32_1 = arith.constant 0 : i32
    %c0_i32_2 = arith.constant 0 : i32
    return %c0_i32, %c0_i32_0, %c0_i32_1 : i32, i32, i32
  }
  func.func @transform_2(%arg0: i32, %arg1: i32) -> (i32, i32, i32) {
    %c0_i32 = arith.constant 0 : i32
    %c0_i32_0 = arith.constant 0 : i32
    %c0_i32_1 = arith.constant 0 : i32
    %c0_i32_2 = arith.constant 0 : i32
    return %c0_i32, %c0_i32_0, %c0_i32_1 : i32, i32, i32
  }
  func.func @transform_3(%arg0: i32, %arg1: i32) -> (i32, i32) {
    %c0_i32 = arith.constant 0 : i32
    %c0_i32_0 = arith.constant 0 : i32
    return %arg0, %c0_i32 : i32, i32
  }
}

</mosaic_0001>

<bundles_post_ra>
// kernel: tpu_custom_call.1
= control target key start
LH: loop header
LB: loop body
LE: loop exit
PB: predicated region body
PF: predicated region fallthrough
CT: control target
= control target key end

     0   :  { %8 = vsyncpa [#allocation3], 0  ;;  %s790_s0 = inlined_call_operand.hbm [shape: f32[8,128], index: 0, kind: input, shape index: {}]   ;;  %s791_s1 = inlined_call_operand.hbm [shape: f32[2,128,256], index: 1, kind: input, shape index: {}]   ;;  %s792_s2 = inlined_call_operand.hbm [shape: f32[2,1,256], index: 2, kind: input, shape index: {}]   ;;  %s793_s3 = inlined_call_operand.hbm [shape: f32[8,128], index: 3, kind: output, shape index: {}]  }
   0x1   :  { %9 = vsyncpa [#allocation6], 0 }
   0x2   :  { %10 = vsyncpa [#allocation4], 0  ;;  %s673_s12 = smov 0   ;;  %s675_s13 = smov 0  }
   0x3   :  { %s677_s14 = smov 0  }
   0x4 LB: > { %s152_s17 = sshll.u32 %s791_s1, 4  ;;  %s403_s18 = sadd.s32 4294967295, %s643_s14   ;;  %s643_s14 = sphi %s677_s14, %s16_s14   ;;  %s639_s13 = sphi %s675_s13, %s798_s13   ;;  %s635_s12 = sphi %s673_s12, %s797_s12   ;;  %s153_s17 = int_to_ptr.hbm [resolvable:$true] %s152_s17 }
   0x5   : > { %p404_p0 = scmp.ge.s32.totalorder %s643_s14, 1  ;;  %p127_p1 = scmp.lt.s32.totalorder %s643_s14, 3 }
   0x6   : > { %p696_p2 = scmp.eq.s32.totalorder %s403_s18, 0  ;;  %s645_s21 = smov [#allocation5]  }
   0x7   : > { %p700_p3 = pnand %p404_p0, %p127_p1  ;;  %s154_s22 = sshll.u32 %s645_s21, 4  ;;  %s155_s22 = int_to_ptr.vmem [resolvable:$true] %s154_s22 }
   0x8   : > { %s25_s24 = sadd.s32 1, %s639_s13  ;;  %s646_s25 = smov 256  }
   0x9   : > { %p439_p4 = pneg %p700_p3  ;;  %p26_p6 = scmp.ge.s32.totalorder %s25_s24, 2 }
   0xa   : > { %s647_s26 = smov 16   ;;  %s141_s29 = sshll.u32 %s790_s0, 4  ;;  %s142_s29 = int_to_ptr.hbm [resolvable:$true] %s141_s29 }
   0xb   : > { %p708_p5 = pnand %p696_p2, %p439_p4  ;;  %s800_s24 = smov (%p26_p6, %s25_s24), 0 }
   0xc   : > { %s648_s30 = smov [#allocation2]   ;;  %s166_s7 = sshll.u32 %s792_s2, 4  ;;  %s167_s7 = int_to_ptr.hbm [resolvable:$true] %s166_s7 }
   0xd   : > { %445 = dma.hbm_to_vmem [thread:$0]  (!%p708_p5), %s153_s17, 8192, %s155_s22, [#allocation6], %s646_s25, %s646_s25, %s647_s26  }
   0xe   : > { %s143_s4 = sshll.u32 %s648_s30, 4  ;;  %s649_s8 = smov [#allocation7]   ;;  %s144_s4 = int_to_ptr.vmem [resolvable:$true] %s143_s4 }
   0xf   : > { %442 = dma.hbm_to_vmem [thread:$0]  (!%p708_p5), %s142_s29, 128, %s144_s4, [#allocation3]  }
  0x10   : > { %s168_s9 = sshll.u32 %s649_s8, 4  ;;  %s650_s10 = smov 32   ;;  %s169_s9 = int_to_ptr.vmem [resolvable:$true] %s168_s9 }
  0x11   : > { %s651_s11 = smov 2   ;;  %184 = sbr.rel (%p700_p3) target bundleno = 228 (0xe4), region = 32 }
  0x12   : > { %448 = dma.hbm_to_vmem [thread:$0]  (!%p708_p5), %s167_s7, 64, %s169_s9, [#allocation6], %s650_s10, %s650_s10, %s651_s11  }
  0x16   : > { %622 = dma.done.wait (%p696_p2), [#allocation3], 128  }
  0x17   : > { %624 = vsyncadd (%p696_p2), [#allocation3], 4294967168 }
  0x18   : > { %626 = dma.done.wait (%p696_p2), [#allocation6], 8256  }
  0x19   : > { %628 = vsyncadd (%p696_p2), [#allocation6], 4294959040  ;;  %p412_p7 = scmp.ne.s32.totalorder %s635_s12, 0 }
  0x1b   : > { %212 = sbr.rel (%p412_p7) target bundleno = 34 (0x22), region = 48 }
  0x20   : > { %v213_v0 = vld [vmem:[#allocation2] sm:$0xff] }
  0x21   : > { %214 = vst [vmem:[#allocation8] sm:$0xff] %v213_v0 }
  0x22 PF: > { %s422_s15 = sshll.u32 %s635_s12, 8  ;;  %s415_s17 = sshll.u32 %s635_s12, 1 }
  0x23   : > { %s739_s16 = scalar_lea.vmem [#allocation5], %s422_s15  ;;  %s252_s19 = scalar_lea.vmem [#allocation7], %s415_s17 }
  0x24   : > { %v250_v1 = vld [vmem:[%s739_s16 + $0xf8] sm:$0xff]  ;;  %v248_v2 = vld [vmem:[%s739_s16 + $0xe8] sm:$0xff]  ;;  %v249_v3 = vld [vmem:[%s739_s16 + $0xf0] sm:$0xff]  ;;  %p416_p8 = scmp.eq.s32.totalorder %s635_s12, 1 }
  0x25   : > { %279 = vmatpush.msra.mxu1 %v250_v1  ;;  %v246_v4 = vld [vmem:[%s739_s16 + $0xd8] sm:$0xff]  ;;  %259 = vmatpush.msra.mxu0 %v249_v3  ;;  %v247_v5 = vld [vmem:[%s739_s16 + $0xe0] sm:$0xff]  ;;  %v245_v6 = vld [vmem:[%s739_s16 + $0xd0] sm:$0xff] }
  0x26   : > { %v244_v7 = vld [vmem:[%s739_s16 + $0xc8] sm:$0xff]  ;;  %v243_v8 = vld [vmem:[%s739_s16 + $0xc0] sm:$0xff]  ;;  %v242_v9 = vld [vmem:[%s739_s16 + $0xb8] sm:$0xff] }
  0x27   : > { %280 = vmatpush.msra.mxu1 %v248_v2  ;;  %260 = vmatpush.msra.mxu0 %v247_v5  ;;  %v241_v10 = vld [vmem:[%s739_s16 + $0xb0] sm:$0xff]  ;;  %v240_v11 = vld [vmem:[%s739_s16 + $0xa8] sm:$0xff]  ;;  %v239_v12 = vld [vmem:[%s739_s16 + $0xa0] sm:$0xff] }
  0x28   : > { %v238_v13 = vld [vmem:[%s739_s16 + $0x98] sm:$0xff]  ;;  %v237_v14 = vld [vmem:[%s739_s16 + $0x90] sm:$0xff]  ;;  %v236_v15 = vld [vmem:[%s739_s16 + $0x88] sm:$0xff] }
  0x29   : > { %281 = vmatpush.msra.mxu1 %v246_v4  ;;  %261 = vmatpush.msra.mxu0 %v245_v6  ;;  %v235_v16 = vld [vmem:[%s739_s16 + $0x80] sm:$0xff]  ;;  %v234_v17 = vld [vmem:[%s739_s16 + $0x78] sm:$0xff]  ;;  %v233_v18 = vld [vmem:[%s739_s16 + $0x70] sm:$0xff] }
  0x2a   : > { %v232_v19 = vld [vmem:[%s739_s16 + $0x68] sm:$0xff]  ;;  %v231_v20 = vld [vmem:[%s739_s16 + $0x60] sm:$0xff]  ;;  %v230_v21 = vld [vmem:[%s739_s16 + $0x58] sm:$0xff] }
  0x2b   : > { %282 = vmatpush.msra.mxu1 %v244_v7  ;;  %262 = vmatpush.msra.mxu0 %v243_v8  ;;  %v229_v22 = vld [vmem:[%s739_s16 + $0x50] sm:$0xff]  ;;  %v228_v23 = vld [vmem:[%s739_s16 + $0x48] sm:$0xff]  ;;  %v227_v24 = vld [vmem:[%s739_s16 + $0x40] sm:$0xff] }
  0x2c   : > { %v226_v25 = vld [vmem:[%s739_s16 + $0x38] sm:$0xff]  ;;  %v225_v26 = vld [vmem:[%s739_s16 + $0x30] sm:$0xff]  ;;  %v224_v27 = vld [vmem:[%s739_s16 + $0x28] sm:$0xff] }
  0x2d   : > { %283 = vmatpush.msra.mxu1 %v242_v9  ;;  %263 = vmatpush.msra.mxu0 %v241_v10  ;;  %v223_v28 = vld [vmem:[%s739_s16 + $0x20] sm:$0xff]  ;;  %v222_v29 = vld [vmem:[%s739_s16 + $0x18] sm:$0xff]  ;;  %v221_v30 = vld [vmem:[%s739_s16 + $0x10] sm:$0xff] }
  0x2e   : > { %v220_v31 = vld [vmem:[%s739_s16 + $0x8] sm:$0xff]  ;;  %v219_v33 = vld [vmem:[%s739_s16] sm:$0xff] }
  0x2f   : > { %284 = vmatpush.msra.mxu1 %v240_v11  ;;  %264 = vmatpush.msra.mxu0 %v239_v12  ;;  %v215_v32 = vld [vmem:[#allocation8] sm:$0xff]  ;;  %v253_v34 = vld [vmem:[%s252_s19] sm:$0x3] }
  0x30   : > { %v256_v35 = vperm.slane %v253_v34, 1  ;;  %v255_v37 = vperm.slane %v253_v34, 0 }
  0x31   : > { %285 = vmatpush.msra.mxu1 %v238_v13  ;;  %265 = vmatpush.msra.mxu0 %v237_v14 }
  0x33   : > { %286 = vmatpush.msra.mxu1 %v236_v15  ;;  %266 = vmatpush.msra.mxu0 %v235_v16 }
  0x35   : > { %287 = vmatpush.msra.mxu1 %v234_v17  ;;  %267 = vmatpush.msra.mxu0 %v233_v18 }
  0x37   : > { %288 = vmatpush.msra.mxu1 %v232_v19  ;;  %268 = vmatpush.msra.mxu0 %v231_v20 }
  0x39   : > { %289 = vmatpush.msra.mxu1 %v230_v21  ;;  %269 = vmatpush.msra.mxu0 %v229_v22 }
  0x3b   : > { %290 = vmatpush.msra.mxu1 %v228_v23  ;;  %270 = vmatpush.msra.mxu0 %v227_v24 }
  0x3d   : > { %291 = vmatpush.msra.mxu1 %v226_v25  ;;  %271 = vmatpush.msra.mxu0 %v225_v26 }
  0x3f   : > { %292 = vmatpush.msra.mxu1 %v224_v27  ;;  %272 = vmatpush.msra.mxu0 %v223_v28 }
  0x41   : > { %293 = vmatpush.msra.mxu1 %v222_v29  ;;  %273 = vmatpush.msra.mxu0 %v221_v30 }
  0x43   : > { %294 = vmatpush.msra.mxu1 %v220_v31  ;;  %274 = vmatpush.msra.mxu0 %v219_v33 }
  0x44   : > { %295 = vmatmul.f32.vlgmr.msra.gmra.mxu1 %v215_v32  ;;  %275 = vmatmul.f32.vlgmr.msra.gmra.mxu0 %v215_v32 }
  0xc1   : > { %v296_v36 = vpop.f32.mrf.mxu1  ;;  %v276_v39 = vpop.f32.mrf.mxu0 }
  0xc2   : > { %v297_v38 = vadd.f32 %v296_v36, %v256_v35  ;;  %v277_v41 = vadd.f32 %v276_v39, %v255_v37 }
  0xc4   : > { %v300_v40 = vmul.f32 0.5, %v297_v38  ;;  %v299_v42 = vmax.f32 %v277_v41, 0.0 }
  0xc6   : > { %489 = vtanh.f32 %v300_v40  ;;  %v304_v45 = vsub.f32 %v215_v32, %v299_v42 }
  0xcc   : > { %v490_v43 = vpop.eup %489 }
  0xcd   : > { %v302_v44 = vmul.f32 0.5, %v490_v43 }
  0xcf   : > { %v303_v46 = vadd.f32 0.5, %v302_v44  ;;  %311 = sbr.rel (%p416_p8) target bundleno = 214 (0xd6), region = 52 }
  0xd1   : > { %v305_v47 = vmul.f32 %v304_v45, %v303_v46 }
  0xd3   : > { %v306_v48 = vadd.f32 %v305_v47, %v299_v42 }
  0xd5   : > { %312 = vst [vmem:[#allocation8] sm:$0xff] %v306_v48 }
  0xd6 PF: > { %p417_p9 = scmp.ne.s32.totalorder %s635_s12, 1 }
  0xd8   : > { %315 = sbr.rel (%p417_p9) target bundleno = 222 (0xde), region = 56 }
  0xdd   : > { %316 = vst [vmem:[#allocation8] sm:$0xff] %v306_v48 }
  0xde PF: > { %p455_p10 = scmp.eq.s32.totalorder %s403_s18, 1  ;;  %s327_s22 = sshll.u32 %s793_s3, 4  ;;  %s328_s22 = int_to_ptr.hbm [resolvable:$true] %s327_s22 }
  0xdf   : > { %s652_s23 = smov [#allocation8]  }
  0xe0   : > { %s325_s25 = sshll.u32 %s652_s23, 4  ;;  %s326_s25 = int_to_ptr.vmem [resolvable:$true] %s325_s25 }
  0xe1   : > { %436 = dma.vmem_to_hbm [thread:$0]  (%p455_p10), %s326_s25, 128, %s328_s22, [#allocation4]  }
  0xe2   : > { %630 = dma.done.wait (%p455_p10), [#allocation4], 128  }
  0xe3   : > { %632 = vsyncadd (%p455_p10), [#allocation4], 4294967168 }
  0xe4 PF: > { %s16_s14 = sadd.s32 1, %s643_s14   ;;  %s797_s12 = smov %s639_s13 }
  0xe5   : > { %p13_p11 = scmp.ge.s32.totalorder %s16_s14, 4   ;;  %s798_s13 = smov %s800_s24 }
  0xe7   :  { %15 = sbr.rel (!%p13_p11) target bundleno = 4 (0x4), region = 85 }
  0xec   :  { %341 = vsyncpa [#allocation3], 1 }
  0xed   :  { %343 = vsyncpa [#allocation3 + $0x1], 1 }
  0xee   :  { %344 = vsyncpa [#allocation6], 1 }
  0xef   :  { %345 = vsyncpa [#allocation4], 1 }
  0xf0   :  { %347 = vsyncpa [#allocation4 + $0x1], 1 }

</bundles_post_ra>
